<compile_context>
chip_gen: v7x
topology: tpu7x:2x2x1
jax: 0.10.0
libtpu: 0.0.40
codegen_flags: <defaults>
</compile_context>

<pallas_src>
import jax
import jax.numpy as jnp
from jax.experimental import pallas as pl
from jax.experimental.pallas import tpu as pltpu


def _round_up(x, m):
    return (x + m - 1) // m * m


def _pick_feature_tile(dim, cap):
    """Largest tile <= cap that divides `dim` (dim is a multiple of 128),
    preferring 256-multiples (v6e/v7x MXU native); falls back to 128."""
    if dim <= cap:
        return dim
    best = 128
    t = 256
    while t <= cap:
        if dim % t == 0:
            best = t
        t += 256
    return best


def _vmem_footprint(tm, tk, tn, out_itemsize):
    # double-buffered bf16 x & W tiles, f32 bias, output tiles, f32 accumulator
    return (2 * 2 * tm * tk          # x tile  (bf16, 2 buffers)
            + 2 * 2 * tk * tn        # W tile  (bf16, up to 2 buffers)
            + 2 * 4 * tn             # bias    (f32)
            + 2 * out_itemsize * tm * tn   # output tile
            + 4 * tm * tn)           # f32 accumulator scratch


def _make_kernel(activation):
    """One (tm, tn) output tile, accumulated over the K grid axis in an f32
    VMEM scratch; bias + activation epilogue on the last K step."""
    def kernel(x_ref, w_ref, b_ref, o_ref, acc_ref):
        k = pl.program_id(2)

        @pl.when(k == 0)
        def _():
            acc_ref[...] = jnp.zeros_like(acc_ref)

        acc_ref[...] += jnp.dot(x_ref[...], w_ref[...],
                                preferred_element_type=jnp.float32)

        @pl.when(k == pl.num_programs(2) - 1)
        def _():
            h = acc_ref[...] + b_ref[...]     # f32 epilogue (safe on v5e too)
            if activation is not None:
                h = activation(h)
            o_ref[...] = h.astype(o_ref.dtype)

    return kernel


def prep_params(w, b, *, max_tk=1024, max_tn=512):
    """One-time weight/bias prep (hoist out of the per-call path when the same
    layer is applied repeatedly): transpose W to (in, out), pad feature dims to
    lane-dense 128 multiples, cast W to bf16; bias stays f32."""
    out_feats, in_feats = w.shape
    k_pad = _round_up(in_feats, 128)
    o_pad = _round_up(out_feats, 128)
    tk = _pick_feature_tile(k_pad, max_tk)
    tn = _pick_feature_tile(o_pad, max_tn)

    wt = w.T.astype(jnp.bfloat16)
    if (k_pad, o_pad) == (in_feats, out_feats):
        w_p = wt
    else:
        w_p = jnp.zeros((k_pad, o_pad), jnp.bfloat16).at[
            :in_feats, :out_feats].set(wt)

    bf = b.astype(jnp.float32)
    if o_pad == out_feats:
        b_p = bf.reshape(1, o_pad)
    else:
        b_p = jnp.zeros((1, o_pad), jnp.float32).at[0, :out_feats].set(bf)

    return dict(w_p=w_p, b_p=b_p, in_feats=in_feats, out_feats=out_feats,
                k_pad=k_pad, o_pad=o_pad, tk=tk, tn=tn)


def node_apply_prepped(x, params, *, activation=jax.nn.relu,
                       out_dtype=jnp.bfloat16, tile_m=1024,
                       min_m_steps=4, vmem_budget=12 * 1024 * 1024):
    """NodeApplyModule forward with pre-prepped weights: activation(x @ W.T + b)."""
    n, in_feats = x.shape
    assert in_feats == params["in_feats"]
    k_pad, o_pad = params["k_pad"], params["o_pad"]
    tk, tn = params["tk"], params["tn"]
    out_feats = params["out_feats"]
    out_itemsize = jnp.dtype(out_dtype).itemsize

    # Node tile: multiple of 16 (bf16 sublane packing); capped so the node grid
    # has >= min_m_steps steps (DMA overlap + v7x two-TensorCore sharding).
    m16 = _round_up(n, 16)
    tm = min(_round_up(tile_m, 16), m16)
    tm = min(tm, max(16, _round_up(pl.cdiv(m16, min_m_steps), 16)))
    while tm > 16 and _vmem_footprint(tm, tk, tn, out_itemsize) > vmem_budget:
        tm = max(16, _round_up(tm // 2, 16))
    m_pad = _round_up(n, tm)

    # x stream in bf16 (halves HBM bytes). Fast path: no extra pad pass when
    # the shape is already tile-aligned.
    x_b = x if x.dtype == jnp.bfloat16 else x.astype(jnp.bfloat16)
    if (m_pad, k_pad) == (n, in_feats):
        x_p = x_b
    else:
        x_p = jnp.zeros((m_pad, k_pad), jnp.bfloat16).at[:n, :in_feats].set(x_b)

    gm, gn, gk = m_pad // tm, o_pad // tn, k_pad // tk
    w_resident = (gn == 1 and gk == 1)   # W index_map constant -> 1 buffer
    b_resident = (gn == 1)

    flops = 2 * m_pad * k_pad * o_pad
    bytes_accessed = (2 * m_pad * k_pad + 2 * k_pad * o_pad + 4 * o_pad
                      + out_itemsize * m_pad * o_pad)

    out_padded = pl.pallas_call(
        _make_kernel(activation),
        out_shape=jax.ShapeDtypeStruct((m_pad, o_pad), out_dtype),
        grid_spec=pltpu.PrefetchScalarGridSpec(
            num_scalar_prefetch=0,
            grid=(gm, gn, gk),
            in_specs=[
                # stream node tiles
                pl.BlockSpec((tm, tk), lambda i, j, k: (i, k)),
                # W tile; single-buffered when fully resident
                pl.BlockSpec((tk, tn), lambda i, j, k: (k, j),
                             pipeline_mode=(pl.Buffered(buffer_count=1)
                                            if w_resident else None)),
                # bias tile; single-buffered when resident
                pl.BlockSpec((1, tn), lambda i, j, k: (0, j),
                             pipeline_mode=(pl.Buffered(buffer_count=1)
                                            if b_resident else None)),
            ],
            out_specs=pl.BlockSpec((tm, tn), lambda i, j, k: (i, j)),
            scratch_shapes=[pltpu.VMEM((tm, tn), jnp.float32)],
        ),
        compiler_params=pltpu.CompilerParams(
            dimension_semantics=("parallel", "parallel", "arbitrary"),
        ),
        cost_estimate=pl.CostEstimate(flops=flops, transcendentals=0,
                                      bytes_accessed=bytes_accessed),
    )(x_p, params["w_p"], params["b_p"])

    if (m_pad, o_pad) == (n, out_feats):
        return out_padded                      # aligned fast path: no copy
    return out_padded[:n, :out_feats]


def node_apply(x, w, b, *, activation=jax.nn.relu, out_dtype=jnp.bfloat16, **kw):
    """Convenience wrapper: prep + apply in one call.
    x: (N, in_feats), w: (out_feats, in_feats), b: (out_feats,)."""
    return node_apply_prepped(x, prep_params(w, b), activation=activation,
                              out_dtype=out_dtype, **kw)


if __name__ == "__main__":
    key = jax.random.PRNGKey(0)
    k_x, k_w, k_b = jax.random.split(key, 3)

    # --- Case 1: aligned shapes (512 nodes, 128 -> 128), bf16 output,
    #     weights prepped once (hoisted), 4-step node grid.
    n, fi, fo = 512, 128, 128
    x = jax.random.normal(k_x, (n, fi), jnp.float32)
    bound = 1.0 / fi ** 0.5
    w = jax.random.uniform(k_w, (fo, fi), jnp.float32, -bound, bound)
    b = jax.random.uniform(k_b, (fo,), jnp.float32, -bound, bound)

    params = prep_params(w, b)                      # one-time W/b prep
    out = jax.block_until_ready(node_apply_prepped(x, params))
    assert out.shape == (n, fo) and out.dtype == jnp.bfloat16
    xb = x.astype(jnp.bfloat16).astype(jnp.float32)
    wb = w.astype(jnp.bfloat16).astype(jnp.float32)
    ref = jnp.maximum(xb @ wb.T + b, 0.0)
    err = jnp.max(jnp.abs(out.astype(jnp.float32) - ref))
    assert err < 3e-2, float(err)                   # bf16 output rounding

    # --- Case 2: ragged shapes (77 nodes, 32 -> 48), f32 output path.
    n2, i2, o2 = 77, 32, 48
    b2nd = 1.0 / i2 ** 0.5
    x2 = jax.random.normal(k_x, (n2, i2), jnp.float32)
    w2 = jax.random.uniform(k_w, (o2, i2), jnp.float32, -b2nd, b2nd)
    b2 = jax.random.uniform(k_b, (o2,), jnp.float32, -b2nd, b2nd)
    out2 = jax.block_until_ready(node_apply(x2, w2, b2, out_dtype=jnp.float32))
    ref2 = jnp.maximum(
        x2.astype(jnp.bfloat16).astype(jnp.float32)
        @ w2.astype(jnp.bfloat16).astype(jnp.float32).T + b2, 0.0)
    assert out2.shape == (n2, o2) and out2.dtype == jnp.float32
    assert jnp.allclose(out2, ref2, atol=2e-3, rtol=2e-3), float(
        jnp.max(jnp.abs(out2 - ref2)))

    # --- Case 3: force the OUT/K-tiled path (small tile caps) to exercise the
    #     accumulator + init/finalize branches (grid = (3, 2, 2)).
    n3, i3, o3 = 48, 256, 256
    b3nd = 1.0 / i3 ** 0.5
    x3 = jax.random.normal(k_x, (n3, i3), jnp.float32)
    w3 = jax.random.uniform(k_w, (o3, i3), jnp.float32, -b3nd, b3nd)
    b3 = jax.random.uniform(k_b, (o3,), jnp.float32, -b3nd, b3nd)
    p3 = prep_params(w3, b3, max_tk=128, max_tn=128)
    out3 = jax.block_until_ready(
        node_apply_prepped(x3, p3, out_dtype=jnp.float32))
    ref3 = jnp.maximum(
        x3.astype(jnp.bfloat16).astype(jnp.float32)
        @ w3.astype(jnp.bfloat16).astype(jnp.float32).T + b3, 0.0)
    assert out3.shape == (n3, o3) and out3.dtype == jnp.float32
    assert jnp.allclose(out3, ref3, atol=5e-3, rtol=5e-3), float(
        jnp.max(jnp.abs(out3 - ref3)))

    # TODO(synk): inputs/weights stream as bf16 (f32 accumulation); exact f32
    # nn.Linear parity would need an f32 (or bf16x3) matmul path.
    print("KERNEL_OK")
</pallas_src>

<mosaic_0001>
module attributes {stable_mosaic.version = 11 : i64} {
  func.func @kernel(%arg0: i32, %arg1: i32, %arg2: i32, %arg3: memref<128x128xbf16, #tpu.memory_space<vmem>>, %arg4: memref<128x128xbf16, #tpu.memory_space<vmem>>, %arg5: memref<1x128xf32, #tpu.memory_space<vmem>>, %arg6: memref<128x128xbf16, #tpu.memory_space<vmem>>, %arg7: memref<128x128xf32, #tpu.memory_space<vmem>>) attributes {dimension_semantics = [#tpu.dimension_semantics<parallel>, #tpu.dimension_semantics<parallel>, #tpu.dimension_semantics<arbitrary>], iteration_bounds = array<i64: 4, 1, 1>, scalar_prefetch = 0 : i64, scratch_operands = 1 : i64, tpu.core_type = #tpu.core_type<tc>, window_params = [{transform_indices = @transform_0, window_bounds = array<i64: 128, 128>}, {pipeline_mode = #tpu.pipeline_mode<synchronous>, transform_indices = @transform_1, window_bounds = array<i64: 128, 128>}, {pipeline_mode = #tpu.pipeline_mode<synchronous>, transform_indices = @transform_2, window_bounds = array<i64: 1, 128>}, {transform_indices = @transform_3, window_bounds = array<i64: 128, 128>}]} {
    %c0_i32 = arith.constant 0 : i32
    %0 = arith.cmpi eq, %arg2, %c0_i32 : i32
    %1 = arith.extui %0 : i1 to i32
    %c0_i32_0 = arith.constant 0 : i32
    %2 = arith.cmpi ne, %1, %c0_i32_0 : i32
    scf.if %2 {
      %cst_10 = arith.constant 0.000000e+00 : f32
      %12 = vector.broadcast %cst_10 : f32 to vector<128x128xf32>
      %c0_11 = arith.constant 0 : index
      %c0_12 = arith.constant 0 : index
      %13 = vector.load %arg7[%c0_11, %c0_12] : memref<128x128xf32, #tpu.memory_space<vmem>>, vector<128x128xf32>
      tpu.vector_store %arg7[%c0_11, %c0_12], %12 {strides = array<i32>} : memref<128x128xf32, #tpu.memory_space<vmem>>, vector<128x128xf32>,
    } else {
    }
    %c0 = arith.constant 0 : index
    %c0_1 = arith.constant 0 : index
    %3 = vector.load %arg7[%c0, %c0_1] : memref<128x128xf32, #tpu.memory_space<vmem>>, vector<128x128xf32>
    %c0_2 = arith.constant 0 : index
    %c0_3 = arith.constant 0 : index
    %4 = vector.load %arg3[%c0_2, %c0_3] : memref<128x128xbf16, #tpu.memory_space<vmem>>, vector<128x128xbf16>
    %c0_4 = arith.constant 0 : index
    %c0_5 = arith.constant 0 : index
    %5 = vector.load %arg4[%c0_4, %c0_5] : memref<128x128xbf16, #tpu.memory_space<vmem>>, vector<128x128xbf16>
    %cst = arith.constant dense<0.000000e+00> : vector<128x128xf32>
    %6 = tpu.matmul %4, %5, %cst {dimension_numbers = #tpu.dot_dimension_numbers<[1], [0], [0], [1], [0, 0, 1, 1], [], []>} : vector<128x128xbf16>, vector<128x128xbf16>, vector<128x128xf32> -> vector<128x128xf32>
    %7 = arith.addf %3, %6 : vector<128x128xf32>
    %c0_6 = arith.constant 0 : index
    %c0_7 = arith.constant 0 : index
    %8 = vector.load %arg7[%c0_6, %c0_7] : memref<128x128xf32, #tpu.memory_space<vmem>>, vector<128x128xf32>
    tpu.vector_store %arg7[%c0_6, %c0_7], %7 {strides = array<i32>} : memref<128x128xf32, #tpu.memory_space<vmem>>, vector<128x128xf32>,
    %c0_i32_8 = arith.constant 0 : i32
    %9 = arith.cmpi eq, %arg2, %c0_i32_8 : i32
    %10 = arith.extui %9 : i1 to i32
    %c0_i32_9 = arith.constant 0 : i32
    %11 = arith.cmpi ne, %10, %c0_i32_9 : i32
    scf.if %11 {
      %c0_10 = arith.constant 0 : index
      %c0_11 = arith.constant 0 : index
      %12 = vector.load %arg7[%c0_10, %c0_11] : memref<128x128xf32, #tpu.memory_space<vmem>>, vector<128x128xf32>
      %c0_12 = arith.constant 0 : index
      %c0_13 = arith.constant 0 : index
      %13 = vector.load %arg5[%c0_12, %c0_13] : memref<1x128xf32, #tpu.memory_space<vmem>>, vector<1x128xf32>
      %14 = vector.broadcast %13 : vector<1x128xf32> to vector<128x128xf32>
      %15 = arith.addf %12, %14 : vector<128x128xf32>
      %cst_14 = arith.constant 0.000000e+00 : f32
      %16 = vector.broadcast %cst_14 : f32 to vector<128x128xf32>
      %17 = arith.maximumf %15, %16 : vector<128x128xf32>
      %18 = arith.truncf %17 : vector<128x128xf32> to vector<128x128xbf16>
      %c0_15 = arith.constant 0 : index
      %c0_16 = arith.constant 0 : index
      %19 = vector.load %arg6[%c0_15, %c0_16] : memref<128x128xbf16, #tpu.memory_space<vmem>>, vector<128x128xbf16>
      tpu.vector_store %arg6[%c0_15, %c0_16], %18 {strides = array<i32>} : memref<128x128xbf16, #tpu.memory_space<vmem>>, vector<128x128xbf16>,
    } else {
    }
    return
  }
  func.func @transform_0(%arg0: i32, %arg1: i32, %arg2: i32) -> (i32, i32) {
    %c0_i32 = arith.constant 0 : i32
    return %arg0, %arg2 : i32, i32
  }
  func.func @transform_1(%arg0: i32, %arg1: i32, %arg2: i32) -> (i32, i32) {
    %c0_i32 = arith.constant 0 : i32
    return %arg2, %arg1 : i32, i32
  }
  func.func @transform_2(%arg0: i32, %arg1: i32, %arg2: i32) -> (i32, i32) {
    %c0_i32 = arith.constant 0 : i32
    %c0_i32_0 = arith.constant 0 : i32
    return %c0_i32, %arg1 : i32, i32
  }
  func.func @transform_3(%arg0: i32, %arg1: i32, %arg2: i32) -> (i32, i32) {
    %c0_i32 = arith.constant 0 : i32
    return %arg0, %arg1 : i32, i32
  }
}

</mosaic_0001>

<bundles_post_ra>
// kernel: tpu_custom_call.1
= control target key start
LH: loop header
LB: loop body
LE: loop exit
PB: predicated region body
PF: predicated region fallthrough
CT: control target
= control target key end

     0   :  { %8 = vsyncpa [#allocation4], 0  ;;  %s1514_s0 = inlined_call_operand.hbm [shape: bf16[512,128], index: 0, kind: input, shape index: {}]   ;;  %s1515_s1 = inlined_call_operand.hbm [shape: bf16[128,128], index: 1, kind: input, shape index: {}]   ;;  %s1516_s2 = inlined_call_operand.vmem [shape: f32[1,128], index: 2, kind: input, shape index: {}]   ;;  %s1517_s3 = inlined_call_operand.hbm [shape: bf16[512,128], index: 3, kind: output, shape index: {}]  }
   0x1   :  { %10 = vsyncpa [#allocation4 + $0x1], 0 }
   0x2   :  { %11 = vsyncpa [#allocation7], 0 }
   0x3   :  { %12 = vsyncpa [#allocation5], 0 }
   0x4   :  { %14 = vsyncpa [#allocation5 + $0x1], 0  ;;  %s1263_s12 = smov 0   ;;  %s1265_s13 = smov 0  }
   0x5   :  { %s1267_s14 = smov 0   ;;  %s1269_s15 = smov 0  }
   0x6   :  { %s1271_s16 = smov 0   ;;  %s1273_s17 = smov 0  }
   0x7 LB: > { %s817_s18 = sadd.s32 4294967295, %s1234_s17   ;;  %s818_s19 = sadd.s32 4294967294, %s1234_s17   ;;  %s1234_s17 = sphi %s1273_s17, %s20_s17   ;;  %s1230_s16 = sphi %s1271_s16, %s1540_s16   ;;  %s1226_s15 = sphi %s1269_s15, %s1539_s15   ;;  %s1222_s14 = sphi %s1267_s14, %s1538_s14   ;;  %s1218_s13 = sphi %s1265_s13, %s1537_s13   ;;  %s1214_s12 = sphi %s1263_s12, %s1536_s12  }
   0x8   : > { %p61_p0 = scmp.ne.s32.totalorder %s1218_s13, %s1214_s12  ;;  %p1297_p1 = scmp.eq.s32.totalorder %s817_s18, 0 }
   0x9   : > { %p1301_p2 = scmp.eq.s32.totalorder %s817_s18, 3  ;;  %p147_p3 = scmp.eq.s32.totalorder %s818_s19, 3 }
   0xa   : > { %s1522_s20 = scalar_select %p1297_p1, 1, 0 }
   0xb   : > { %s1523_s21 = scalar_select %p1301_p2, 1, 0 }
   0xc   : > { %p1307_p4 = por %p1297_p1, %p61_p0  ;;  %p819_p5 = scmp.ge.s32.totalorder %s1234_s17, 1 }
   0xd   : > { %p1312_p6 = por %p147_p3, %p61_p0  ;;  %p154_p7 = scmp.lt.s32.totalorder %s1234_s17, 5 }
   0xe   : > { %s1524_s22 = scalar_select %p1307_p4, 1, 0 }
   0xf   : > { %s1525_s23 = scalar_select %p1312_p6, 1, 0 }
  0x10   : > { %p1317_p8 = pnand %p819_p5, %p154_p7  ;;  %s1236_s25 = smov [#allocation6]  }
  0x11   : > { %s170_s26 = sshll.u32 %s1236_s25, 4  ;;  %s39_s28 = sadd.s32 1, %s1230_s16  ;;  %s171_s26 = int_to_ptr.vmem [resolvable:$true] %s170_s26 }
  0x12   : > { %s1526_s24 = scalar_select %p1317_p8, 1, 0 }
  0x13   : > { %p1005_p9 = pneg %p1317_p8  ;;  %s1090_s4 = scalar_lea.hbm %s1515_s1, 1024 }
  0x14   : > { %p1091_p11 = scmp.ne.s32.totalorder %s1515_s1, %s1090_s4  ;;  %p1097_p3 = scmp.lt.u32.totalorder %s1090_s4, %s1515_s1 }
  0x15   : > { %p1325_p10 = pnand %p1005_p9, %p1297_p1 }
  0x17   : > { %p1092_p12 = pneg %p1325_p10 }
  0x19   : > { %p1093_p13 = pnand %p1092_p12, %p1091_p11 }
  0x1b   : > { %p1094_p0 = pneg %p1093_p13 }
  0x1d   : > { %p1099_p5 = pnand %p1097_p3, %p1094_p0 }
  0x1f   : > { %1102 = shalt.err (!%p1099_p5)
}
  0x20   : > { %s1103_s9 = scalar_lea.vmem %s171_s26, 1024  ;;  %p1111_p1 = scmp.lt.s32.totalorder %s171_s26, %s171_s26 }
  0x21   : > { %p1104_p7 = scmp.ne.s32.totalorder %s171_s26, %s1103_s9  ;;  %p1112_p4 = scmp.lt.s32.totalorder %s1103_s9, %s1103_s9 }
  0x23   : > { %p1106_p9 = pnand %p1104_p7, %p1092_p12  ;;  %p1113_p8 = por %p1112_p4, %p1111_p1 }
  0x25   : > { %p1107_p6 = pneg %p1106_p9 }
  0x27   : > { %p1114_p2 = pnand %p1113_p8, %p1107_p6 }
  0x29   : > { %1117 = shalt.err (!%p1114_p2)
}
  0x2a   : > { %s1237_s10 = smov 64   ;;  %s1238_s11 = smov 4  }
  0x2b   : > { %1008 = dma.hbm_to_vmem [thread:$0]  (!%p1325_p10), %s1515_s1, 1024, %s171_s26, [#allocation7], %s1237_s10, %s1237_s10, %s1238_s11  }
  0x2c   : > { %p41_p1 = scmp.ge.s32.totalorder %s39_s28, 4  ;;  %s48_s25 = sadd.s32 1, %s1222_s14 }
  0x2d   : > { %p55_p2 = scmp.ne.s32.totalorder %s1222_s14, %s1218_s13  ;;  %p56_p4 = scmp.eq.s32.totalorder %s1234_s17, 0 }
  0x2e   : > { %s1542_s28 = smov (%p41_p1, %s39_s28), 0  ;;  %p1529_p8 = scmp.ne.s32.totalorder %s1523_s21, 0 }
  0x2f   : > { %p1355_p6 = por %p56_p4, %p55_p2  ;;  %s43_s30 = ssub.s32 %s1230_s16, %s1542_s28 }
  0x30   : > { %p1361_p11 = por %p1529_p8, %p55_p2  ;;  %p1018_p12 = scmp.lt.s32.totalorder %s1234_s17, 4 }
  0x31   : > { %p46_p10 = scmp.eq.s32.totalorder %s43_s30, 0  ;;  %s190_s26 = sand.u32 1, %s1222_s14  }
  0x32   : > { %s823_s4 = sshll.u32 %s190_s26, 6  ;;  %s868_s6 = sshll.u32 %s1230_s16, 10 }
  0x33   : > { %s1370_s5 = scalar_select %p46_p10, %s1222_s14, %s48_s25  }
  0x34   : > { %s1376_s9 = scalar_lea.hbm %s1514_s0, %s868_s6  ;;  %s194_s21 = scalar_lea.vmem [#allocation3], %s823_s4 }
  0x35   : > { %s202_s18 = sshll.u32 %s194_s21, 4  ;;  %p1382_p13 = pnand %p1018_p12, %p1355_p6  ;;  %s1378_s18 = int_to_ptr.vmem [resolvable:$true] %s202_s18 }
  0x36   : > { %s1386_s25 = scalar_lea.sflag [#allocation4], %s190_s26  ;;  %s1118_s30 = scalar_lea.hbm %s1376_s9, 1024 }
  0x37   : > { %p1119_p0 = scmp.ne.s32.totalorder %s1376_s9, %s1118_s30  ;;  %p1120_p3 = pneg %p1382_p13 }
  0x38   : > { %s1123_s29 = scalar_lea.hbm %s1514_s0, 4096  ;;  %p1124_p9 = scmp.lt.u32.totalorder %s1376_s9, %s1514_s0 }
  0x39   : > { %p1121_p5 = pnand %p1120_p3, %p1119_p0  ;;  %p1125_p1 = scmp.lt.u32.totalorder %s1123_s29, %s1118_s30 }
  0x3a   : > { %p1127_p4 = scmp.lt.u32.totalorder %s1118_s30, %s1376_s9 }
  0x3b   : > { %p1122_p7 = pneg %p1121_p5  ;;  %p1126_p2 = por %p1125_p1, %p1124_p9 }
  0x3d   : > { %p1128_p6 = por %p1127_p4, %p1126_p2 }
  0x3f   : > { %p1129_p8 = pnand %p1128_p6, %p1122_p7 }
  0x41   : > { %1132 = shalt.err (!%p1129_p8)
}
  0x42   : > { %s1133_s26 = scalar_lea.vmem %s1378_s18, 1024  ;;  %s1239_s21 = smov [#allocation3]  }
  0x43   : > { %p1134_p12 = scmp.ne.s32.totalorder %s1378_s18, %s1133_s26  ;;  %s1138_s4 = sshll.u32 %s1239_s21, 4  ;;  %s1139_s4 = int_to_ptr.vmem [resolvable:$false] %s1138_s4 }
  0x44   : > { %s1140_s6 = scalar_lea.vmem %s1139_s4, 2048  ;;  %p1141_p5 = scmp.lt.s32.totalorder %s1378_s18, %s1139_s4 }
  0x45   : > { %p1136_p10 = pnand %p1134_p12, %p1120_p3  ;;  %p1142_p9 = scmp.lt.s32.totalorder %s1140_s6, %s1133_s26 }
  0x47   : > { %p1137_p0 = pneg %p1136_p10  ;;  %p1143_p1 = por %p1142_p9, %p1141_p5 }
  0x49   : > { %p1144_p2 = pnand %p1143_p1, %p1137_p0 }
  0x4b   : > { %1147 = shalt.err (!%p1144_p2)
}
  0x4c   : > { %1012 = dma.hbm_to_vmem [thread:$0]  (!%p1382_p13), %s1376_s9, 1024, %s1378_s18, %s1386_s25, %s1237_s10, %s1237_s10, %s1238_s11  }
  0x4d   : > { %p1532_p3 = scmp.ne.s32.totalorder %s1526_s24, 0 }
  0x4e   : > { %s1420_s30 = sand.u32 (!%p1532_p3), 1, %s1218_s13   ;;  %p1533_p7 = scmp.ne.s32.totalorder (!%p1532_p3), %s1524_s22, 0 }
  0x4f   : > { %214 = sbr.rel (%p1532_p3) target bundleno = 367 (0x16f), region = 32  ;;  %s827_s29 = sshll.u32 (!%p1532_p3), %s1420_s30, 6 }
  0x50   : > { %s217_s7 = scalar_lea.sflag (!%p1532_p3), [#allocation4], %s1420_s30  ;;  %s1426_s19 = scalar_lea.vmem (!%p1532_p3), [#allocation3], %s827_s29 }
  0x56   : > { %1201 = dma.done.wait (%p1533_p7), %s217_s7, 1024  }
  0x57   : > { %1203 = vsyncadd (%p1533_p7), %s217_s7, 4294966272  ;;  %p1534_p13 = scmp.ne.s32.totalorder %s1522_s20, 0 }
  0x59   : > { %1205 = dma.done.wait (%p1534_p13), [#allocation7], 1024  }
  0x5a   : > { %1207 = vsyncadd (%p1534_p13), [#allocation7], 4294966272  ;;  %v1074_v0 = vld [vmem:[#allocation6] sm:$0xff]   ;;  %v1075_v1 = vld [vmem:[#allocation6 + $0x8] sm:$0xff]   ;;  %s1449_s24 = scalar_lea.vmem [#allocation8], %s827_s29  ;;  %s885_s11 = sshll.u32 %s1226_s15, 10 }
  0x5b   : > { %949 = vmatprep.subr.bf16.mxu0 %v1074_v0  ;;  %981 = vmatprep.subr.bf16.mxu1 %v1074_v0  ;;  %v1076_v2 = vld [vmem:[#allocation6 + $0x10] sm:$0xff]   ;;  %v1077_v3 = vld [vmem:[#allocation6 + $0x18] sm:$0xff]   ;;  %v1082_v4 = vld [vmem:[%s1426_s19] sm:$0xff]   ;;  %s703_s10 = sshll.u32 %s1449_s24, 4  ;;  %s1462_s18 = scalar_lea.hbm %s1517_s3, %s885_s11  ;;  %s1457_s10 = int_to_ptr.vmem [resolvable:$true] %s703_s10 }
  0x5c   : > { %950 = vmatpush3.bf16.msra.mxu0 %v1074_v0  ;;  %989 = vmatpush3.bf16.msra.mxu1 %v1074_v0  ;;  %v1083_v5 = vld [vmem:[%s1426_s19 + $0x20] sm:$0xff]   ;;  %v1079_v7 = vld [vmem:[#allocation6 + $0x28] sm:$0xff]   ;;  %v1080_v8 = vld [vmem:[#allocation6 + $0x30] sm:$0xff]   ;;  %s689_s25 = scalar_lea.sflag [#allocation5], %s1420_s30  ;;  %s1148_s8 = scalar_lea.vmem %s1457_s10, 1024 }
  0x5d   : > { %951 = vmatprep.subr.bf16.mxu0 %v1075_v1  ;;  %982 = vmatprep.subr.bf16.mxu1 %v1075_v1  ;;  %v1078_v6 = vld [vmem:[#allocation6 + $0x20] sm:$0xff]   ;;  %v1081_v9 = vld [vmem:[#allocation6 + $0x38] sm:$0xff]   ;;  %v1084_v10 = vld [vmem:[%s1426_s19 + $0x8] sm:$0xff]   ;;  %p1149_p4 = scmp.ne.s32.totalorder %s1457_s10, %s1148_s8  ;;  %s1240_s26 = smov [#allocation8]  }
  0x5e   : > { %965 = vmatprep.mubr.bf16.mxu0 %v1082_v4  ;;  %973 = vmatprep.mubr.bf16.mxu1 %v1083_v5  ;;  %v1085_v11 = vld [vmem:[%s1426_s19 + $0x28] sm:$0xff]   ;;  %v1086_v12 = vld [vmem:[%s1426_s19 + $0x10] sm:$0xff]   ;;  %v1088_v14 = vld [vmem:[%s1426_s19 + $0x18] sm:$0xff]   ;;  %s1152_s21 = sshll.u32 %s1240_s26, 4  ;;  %s1153_s21 = int_to_ptr.vmem [resolvable:$false] %s1152_s21 }
  0x5f   : > { %v1087_v13 = vld [vmem:[%s1426_s19 + $0x30] sm:$0xff]   ;;  %v1089_v15 = vld [vmem:[%s1426_s19 + $0x38] sm:$0xff]   ;;  %v846_v16 = vld [vmem:[%s1516_s2] ss:$0 sm:$0xff]  ;;  %p1150_p6 = pnand %p1149_p4, %p1361_p11  ;;  %s1154_s4 = scalar_lea.vmem %s1153_s21, 2048 }
  0x60   : > { %952 = vmatpush3.bf16.msra.mxu0 %v1075_v1  ;;  %990 = vmatpush3.bf16.msra.mxu1 %v1075_v1  ;;  %p1155_p12 = scmp.lt.s32.totalorder %s1457_s10, %s1153_s21  ;;  %p1156_p10 = scmp.lt.s32.totalorder %s1154_s4, %s1148_s8 }
  0x61   : > { %953 = vmatprep.subr.bf16.mxu0 %v1076_v2  ;;  %983 = vmatprep.subr.bf16.mxu1 %v1076_v2  ;;  %p1151_p8 = pneg %p1150_p6 }
  0x62   : > { %p1157_p0 = por %p1156_p10, %p1155_p12 }
  0x64   : > { %954 = vmatpush3.bf16.msra.mxu0 %v1076_v2  ;;  %991 = vmatpush3.bf16.msra.mxu1 %v1076_v2  ;;  %p1158_p5 = pnand %p1157_p0, %p1151_p8 }
  0x65   : > { %955 = vmatprep.subr.bf16.mxu0 %v1077_v3  ;;  %984 = vmatprep.subr.bf16.mxu1 %v1077_v3 }
  0x68   : > { %956 = vmatpush3.bf16.msra.mxu0 %v1077_v3  ;;  %992 = vmatpush3.bf16.msra.mxu1 %v1077_v3 }
  0x69   : > { %957 = vmatprep.subr.bf16.mxu0 %v1078_v6  ;;  %985 = vmatprep.subr.bf16.mxu1 %v1078_v6 }
  0x6c   : > { %958 = vmatpush3.bf16.msra.mxu0 %v1078_v6  ;;  %993 = vmatpush3.bf16.msra.mxu1 %v1078_v6 }
  0x6d   : > { %959 = vmatprep.subr.bf16.mxu0 %v1079_v7  ;;  %986 = vmatprep.subr.bf16.mxu1 %v1079_v7 }
  0x70   : > { %960 = vmatpush3.bf16.msra.mxu0 %v1079_v7  ;;  %994 = vmatpush3.bf16.msra.mxu1 %v1079_v7 }
  0x71   : > { %961 = vmatprep.subr.bf16.mxu0 %v1080_v8  ;;  %987 = vmatprep.subr.bf16.mxu1 %v1080_v8 }
  0x74   : > { %962 = vmatpush3.bf16.msra.mxu0 %v1080_v8  ;;  %995 = vmatpush3.bf16.msra.mxu1 %v1080_v8 }
  0x75   : > { %963 = vmatprep.subr.bf16.mxu0 %v1081_v9  ;;  %988 = vmatprep.subr.bf16.mxu1 %v1081_v9 }
  0x78   : > { %964 = vmatpush3.bf16.msra.mxu0 %v1081_v9  ;;  %996 = vmatpush3.bf16.msra.mxu1 %v1081_v9 }
  0x7b   : > { %966 = vmatmul.mubr.bf16.vlgmr.msra.gmra.mrb[0].mxu0 %v1084_v10  ;;  %974 = vmatmul.mubr.bf16.vlgmr.msra.gmra.mrb[0].mxu1 %v1085_v11 }
  0x7c   : > { %969 = vmatprep.mubr.bf16.mxu0 %v1086_v12  ;;  %977 = vmatprep.mubr.bf16.mxu1 %v1087_v13 }
  0x83   : > { %970 = vmatmul.mubr.bf16.gmra.mrb[4].mxu0 %v1088_v14  ;;  %978 = vmatmul.mubr.bf16.gmra.mrb[4].mxu1 %v1089_v15 }
 0x14e   : > { %v967_v17 = vpop.f32.mrb[0].mxu0  ;;  %v975_v18 = vpop.f32.mrb[0].mxu1 }
 0x14f   : > { %v578_v19 = vadd.f32 %v967_v17, %v846_v16  ;;  %v586_v20 = vadd.f32 %v975_v18, %v846_v16  ;;  %v455_v21 = vpop.f32.mrb[1].mxu0  ;;  %v487_v22 = vpop.f32.mrb[1].mxu1 }
 0x150   : > { %v576_v23 = vadd.f32 %v846_v16, %v455_v21  ;;  %v584_v24 = vadd.f32 %v846_v16, %v487_v22  ;;  %v968_v25 = vpop.f32.mrb[2].mxu0  ;;  %v976_v26 = vpop.f32.mrb[2].mxu1 }
 0x151   : > { %v579_v27 = vadd.f32 %v968_v25, %v846_v16  ;;  %v587_v28 = vadd.f32 %v976_v26, %v846_v16  ;;  %v458_v29 = vpop.f32.mrb[3].mxu0  ;;  %v490_v30 = vpop.f32.mrb[3].mxu1  ;;  %v594_v33 = vmax.f32 %v578_v19, 0.0  ;;  %v602_v34 = vmax.f32 %v586_v20, 0.0 }
 0x152   : > { %v577_v31 = vadd.f32 %v846_v16, %v458_v29  ;;  %v585_v32 = vadd.f32 %v846_v16, %v490_v30  ;;  %v592_v37 = vmax.f32 %v576_v23, 0.0  ;;  %v600_v38 = vmax.f32 %v584_v24, 0.0 }
 0x153   : > { %v595_v35 = vmax.f32 %v579_v27, 0.0  ;;  %v603_v36 = vmax.f32 %v587_v28, 0.0 }
 0x154   : > { %v593_v39 = vmax.f32 %v577_v31, 0.0  ;;  %v601_v40 = vmax.f32 %v585_v32, 0.0 }
 0x155   : > { %v894_v41 = vpack.c.bf16 %v595_v35, %v594_v33  ;;  %v914_v42 = vpack.c.bf16 %v603_v36, %v602_v34 }
 0x156   : > { %v889_v43 = vpack.c.bf16 %v593_v39, %v592_v37  ;;  %v909_v44 = vpack.c.bf16 %v601_v40, %v600_v38  ;;  %v971_v45 = vpop.f32.mrb[4].mxu0  ;;  %v979_v46 = vpop.f32.mrb[4].mxu1 }
 0x157   : > { %926 = vst [vmem:[%s1449_s24 + $0x8] sm:$0xff] %v894_v41   ;;  %930 = vst [vmem:[%s1449_s24 + $0x28] sm:$0xff] %v914_v42   ;;  %v582_v47 = vadd.f32 %v971_v45, %v846_v16  ;;  %v590_v48 = vadd.f32 %v979_v46, %v846_v16  ;;  %v471_v49 = vpop.f32.mrb[5].mxu0  ;;  %v503_v50 = vpop.f32.mrb[5].mxu1 }
 0x158   : > { %890 = vst [vmem:[%s1449_s24] sm:$0xff] %v889_v43   ;;  %929 = vst [vmem:[%s1449_s24 + $0x20] sm:$0xff] %v909_v44   ;;  %v580_v51 = vadd.f32 %v846_v16, %v471_v49  ;;  %v588_v52 = vadd.f32 %v846_v16, %v503_v50  ;;  %v972_v53 = vpop.f32.mrb[6].mxu0  ;;  %v980_v54 = vpop.f32.mrb[6].mxu1 }
 0x159   : > { %v583_v55 = vadd.f32 %v972_v53, %v846_v16  ;;  %v591_v56 = vadd.f32 %v980_v54, %v846_v16  ;;  %v474_v57 = vpop.f32.mrb[7].mxu0  ;;  %v506_v58 = vpop.f32.mrb[7].mxu1  ;;  %v598_v61 = vmax.f32 %v582_v47, 0.0  ;;  %v606_v62 = vmax.f32 %v590_v48, 0.0 }
 0x15a   : > { %v581_v59 = vadd.f32 %v846_v16, %v474_v57  ;;  %v589_v60 = vadd.f32 %v846_v16, %v506_v58  ;;  %v596_v1 = vmax.f32 %v580_v51, 0.0  ;;  %v604_v2 = vmax.f32 %v588_v52, 0.0 }
 0x15b   : > { %v599_v63 = vmax.f32 %v583_v55, 0.0  ;;  %v607_v0 = vmax.f32 %v591_v56, 0.0 }
 0x15c   : > { %v597_v3 = vmax.f32 %v581_v59, 0.0  ;;  %v605_v4 = vmax.f32 %v589_v60, 0.0 }
 0x15d   : > { %v904_v5 = vpack.c.bf16 %v599_v63, %v598_v61  ;;  %v924_v6 = vpack.c.bf16 %v607_v0, %v606_v62 }
 0x15e   : > { %v899_v7 = vpack.c.bf16 %v597_v3, %v596_v1  ;;  %v919_v8 = vpack.c.bf16 %v605_v4, %v604_v2 }
 0x15f   : > { %928 = vst [vmem:[%s1449_s24 + $0x18] sm:$0xff] %v904_v5   ;;  %932 = vst [vmem:[%s1449_s24 + $0x38] sm:$0xff] %v924_v6  }
 0x160   : > { %927 = vst [vmem:[%s1449_s24 + $0x10] sm:$0xff] %v899_v7   ;;  %931 = vst [vmem:[%s1449_s24 + $0x30] sm:$0xff] %v919_v8  }
 0x161   : > { %1161 = shalt.err (!%p1158_p5)
}
 0x162   : > { %s1162_s6 = scalar_lea.hbm %s1462_s18, 1024  ;;  %s1166_s19 = scalar_lea.hbm %s1517_s3, 4096 }
 0x163   : > { %p1163_p9 = scmp.ne.s32.totalorder %s1462_s18, %s1162_s6  ;;  %p1167_p3 = scmp.lt.u32.totalorder %s1462_s18, %s1517_s3 }
 0x164   : > { %p1168_p7 = scmp.lt.u32.totalorder %s1166_s19, %s1162_s6  ;;  %p1170_p4 = scmp.lt.u32.totalorder %s1162_s6, %s1462_s18 }
 0x165   : > { %p1164_p1 = pnand %p1163_p9, %p1361_p11 }
 0x166   : > { %p1169_p13 = por %p1168_p7, %p1167_p3 }
 0x167   : > { %p1165_p2 = pneg %p1164_p1 }
 0x168   : > { %p1171_p6 = por %p1170_p4, %p1169_p13 }
 0x16a   : > { %p1172_p8 = pnand %p1171_p6, %p1165_p2 }
 0x16c   : > { %1175 = shalt.err (!%p1172_p8)
}
 0x16d   : > { %s1241_s24 = smov 64   ;;  %s1242_s11 = smov 4  }
 0x16e   : > { %1003 = dma.vmem_to_hbm [thread:$0]  (%p1361_p11), %s1457_s10, 1024, %s1462_s18, %s689_s25, %s1241_s24, %s1241_s24, %s1242_s11  }
 0x16f PF: > { %p1020_p12 = scmp.ge.s32.totalorder %s1234_s17, 2  ;;  %s718_s15 = sand.u32 1, %s1214_s12  }
 0x170   : > { %p1535_p10 = scmp.ne.s32.totalorder %s1525_s23, 0  ;;  %s719_s9 = scalar_lea.sflag [#allocation5], %s718_s15 }
 0x172   : > { %p1014_p0 = pnand %p1020_p12, %p1535_p10 }
 0x174   : > { %1209 = dma.done.wait (!%p1014_p0), %s719_s9, 1024  }
 0x175   : > { %1211 = vsyncadd (!%p1014_p0), %s719_s9, 4294966272  ;;  %s20_s17 = sadd.s32 1, %s1234_s17   ;;  %s1536_s12 = smov %s1218_s13 }
 0x176   : > { %p17_p5 = scmp.ge.s32.totalorder %s20_s17, 6   ;;  %s1537_s13 = smov %s1222_s14 }
 0x177   : > { %s1538_s14 = smov %s1370_s5  ;;  %s1539_s15 = smov %s1230_s16 }
 0x178   : > { %s1540_s16 = smov %s1542_s28  ;;  %19 = sbr.rel (!%p17_p5) target bundleno = 7 (0x7), region = 93 }
 0x17f   :  { %724 = vsyncpa [#allocation4], 1 }
 0x180   :  { %726 = vsyncpa [#allocation4 + $0x1], 1 }
 0x181   :  { %727 = vsyncpa [#allocation7], 1 }
 0x182   :  { %728 = vsyncpa [#allocation5], 1 }
 0x183   :  { %730 = vsyncpa [#allocation5 + $0x1], 1 }

</bundles_post_ra>
